<compile_context>
chip_gen: v5e
topology: v5e:2x2
jax: 0.10.0
libtpu: 0.0.40
codegen_flags: <defaults>
</compile_context>

<pallas_src>
import functools

import jax
import jax.numpy as jnp
from jax import lax
from jax.experimental import pallas as pl
from jax.experimental.pallas import tpu as pltpu

SUBLANE = 8
LANE = 128


def _round_up(n, m):
    return ((n + m - 1) // m) * m


def fused_linear_kernel(x_ref, w_ref, b_ref, o_ref):
    """o = W_f^T @ x^T + b  ==  (x @ W_f + b)^T, f32 accumulation on the MXU.

    x_ref: (tb, in_f)     batch tile (batch rows on sublanes)
    w_ref: (nc_pad, in_f) folded, transposed weights (resident across steps)
    b_ref: (nc_pad, 1)    folded bias, broadcast along the batch/lane dim
    o_ref: (nc_pad, tb)   transposed output tile (batch on lanes)
    """
    y = lax.dot_general(
        w_ref[...], x_ref[...],
        dimension_numbers=(((1,), (1,)), ((), ())),   # contract in_features
        preferred_element_type=jnp.float32)
    o_ref[...] = (y + b_ref[...]).astype(o_ref.dtype)


def fold_params(w1, b1, w2, b2):
    """Fold fc2(fc1(x)) (no activation in between) into one affine map and lay
    it out for the kernel (transposed, sublane-padded).  Call ONCE and reuse
    the result -- this is the fold/pad work hoisted out of the per-call path."""
    in_f = w1.shape[0]
    num_class = w2.shape[1]
    w_f = w1 @ w2                              # (in_f, num_class)
    b_f = (b1 @ w2 + b2).reshape(num_class)    # (num_class,)
    nc_pad = _round_up(num_class, SUBLANE)     # 10 -> 16 rows (sublane dense)
    wt = jnp.zeros((nc_pad, in_f), jnp.float32).at[:num_class, :].set(w_f.T)
    bt = jnp.zeros((nc_pad, 1), jnp.float32).at[:num_class, 0].set(b_f)
    return wt, bt, num_class


def _pick_batch_tile(B):
    """Batch tile size (rows of x == lanes of the transposed output)."""
    TB_MAX = 1024                 # multiple of 128; ~2.2 MiB VMEM double-buffered
    if B > TB_MAX:
        return TB_MAX
    if B >= 256:
        # At least 2 grid steps so "parallel" can shard across v7x's 2 TCs.
        return _round_up(pl.cdiv(B, 2), LANE)
    return B                      # single step; full-dim blocks are legal


@functools.partial(jax.jit, static_argnames=("num_class",))
def mlp_forward(x, wt, bt, num_class):
    """Forward pass of `net` using the pre-folded params from fold_params().

    Note: at tiny batch (<~64) a plain `x @ W_f + b_f` under jit would beat the
    fixed pallas_call overhead; the Pallas path is kept unconditionally here so
    the kernel is always exercised.
    """
    B, in_f = x.shape
    nc_pad = wt.shape[0]
    tb = _pick_batch_tile(B)
    grid = (pl.cdiv(B, tb),)      # no padded copy of x; edge tile is masked

    out_t = pl.pallas_call(
        fused_linear_kernel,
        out_shape=jax.ShapeDtypeStruct((nc_pad, B), jnp.float32),
        grid=grid,
        in_specs=[
            pl.BlockSpec((tb, in_f), lambda i: (i, 0)),       # x row tiles
            pl.BlockSpec((nc_pad, in_f), lambda i: (0, 0)),   # W_f^T (resident)
            pl.BlockSpec((nc_pad, 1), lambda i: (0, 0)),      # b_f   (resident)
        ],
        out_specs=pl.BlockSpec((nc_pad, tb), lambda i: (0, i)),
        compiler_params=pltpu.CompilerParams(
            dimension_semantics=("parallel",)),
    )(x, wt, bt)

    # Back to the PyTorch orientation (B, num_class); fuses under jit.
    return out_t[:num_class, :].T


def init_params(key, num_class=10):
    # Deterministic init mimicking nn.Linear's default U(-1/sqrt(fan_in), ...).
    k1, k2, k3, k4 = jax.random.split(key, 4)
    bound1 = 1.0 / jnp.sqrt(8.0)
    bound2 = 1.0 / jnp.sqrt(4.0)
    w1 = jax.random.uniform(k1, (8, 4), jnp.float32, -bound1, bound1)
    b1 = jax.random.uniform(k2, (1, 4), jnp.float32, -bound1, bound1)
    w2 = jax.random.uniform(k3, (4, num_class), jnp.float32, -bound2, bound2)
    b2 = jax.random.uniform(k4, (1, num_class), jnp.float32, -bound2, bound2)
    return w1, b1, w2, b2


if __name__ == "__main__":
    key = jax.random.PRNGKey(0)
    kx, kp = jax.random.split(key)

    batch, num_class = 8, 10
    x = jax.random.normal(kx, (batch, 8), jnp.float32)
    w1, b1, w2, b2 = init_params(kp, num_class=num_class)

    # One-time parameter fold + layout (hoisted out of the per-call path).
    wt, bt, num_class = fold_params(w1, b1, w2, b2)
    wt, bt = jax.block_until_ready((wt, bt))

    out = mlp_forward(x, wt, bt, num_class)
    out = jax.block_until_ready(out)

    # Reference: the original (unfolded) two-layer forward.
    ref = (x @ w1 + b1) @ w2 + b2
    assert out.shape == (batch, num_class)
    assert jnp.allclose(out, ref, atol=1e-5, rtol=1e-5)

    print("KERNEL_OK")
</pallas_src>

<mosaic_0001>
module attributes {stable_mosaic.version = 11 : i64} {
  func.func @fused_linear_kernel(%arg0: i32, %arg1: memref<8x8xf32, #tpu.memory_space<vmem>>, %arg2: memref<16x8xf32, #tpu.memory_space<vmem>>, %arg3: memref<16x1xf32, #tpu.memory_space<vmem>>, %arg4: memref<16x8xf32, #tpu.memory_space<vmem>>) attributes {dimension_semantics = [#tpu.dimension_semantics<parallel>], iteration_bounds = array<i64: 1>, scalar_prefetch = 0 : i64, scratch_operands = 0 : i64, tpu.core_type = #tpu.core_type<tc>, window_params = [{transform_indices = @transform_0, window_bounds = array<i64: 8, 8>}, {pipeline_mode = #tpu.pipeline_mode<synchronous>, transform_indices = @transform_1, window_bounds = array<i64: 16, 8>}, {pipeline_mode = #tpu.pipeline_mode<synchronous>, transform_indices = @transform_2, window_bounds = array<i64: 16, 1>}, {transform_indices = @transform_3, window_bounds = array<i64: 16, 8>}]} {
    %c0 = arith.constant 0 : index
    %c0_0 = arith.constant 0 : index
    %0 = vector.load %arg2[%c0, %c0_0] : memref<16x8xf32, #tpu.memory_space<vmem>>, vector<16x8xf32>
    %c0_1 = arith.constant 0 : index
    %c0_2 = arith.constant 0 : index
    %1 = vector.load %arg1[%c0_1, %c0_2] : memref<8x8xf32, #tpu.memory_space<vmem>>, vector<8x8xf32>
    %cst = arith.constant dense<0.000000e+00> : vector<16x8xf32>
    %2 = tpu.matmul %0, %1, %cst {dimension_numbers = #tpu.dot_dimension_numbers<[1], [1], [0], [0], [0, 0, 1, 0], [], []>} : vector<16x8xf32>, vector<8x8xf32>, vector<16x8xf32> -> vector<16x8xf32>
    %c0_3 = arith.constant 0 : index
    %c0_4 = arith.constant 0 : index
    %3 = vector.load %arg3[%c0_3, %c0_4] : memref<16x1xf32, #tpu.memory_space<vmem>>, vector<16x1xf32>
    %4 = vector.broadcast %3 : vector<16x1xf32> to vector<16x8xf32>
    %5 = arith.addf %2, %4 : vector<16x8xf32>
    %c0_5 = arith.constant 0 : index
    %c0_6 = arith.constant 0 : index
    %6 = vector.load %arg4[%c0_5, %c0_6] : memref<16x8xf32, #tpu.memory_space<vmem>>, vector<16x8xf32>
    tpu.vector_store %arg4[%c0_5, %c0_6], %5 {strides = array<i32>} : memref<16x8xf32, #tpu.memory_space<vmem>>, vector<16x8xf32>,
    return
  }
  func.func @transform_0(%arg0: i32) -> (i32, i32) {
    %c0_i32 = arith.constant 0 : i32
    %c0_i32_0 = arith.constant 0 : i32
    return %arg0, %c0_i32 : i32, i32
  }
  func.func @transform_1(%arg0: i32) -> (i32, i32) {
    %c0_i32 = arith.constant 0 : i32
    %c0_i32_0 = arith.constant 0 : i32
    %c0_i32_1 = arith.constant 0 : i32
    return %c0_i32, %c0_i32_0 : i32, i32
  }
  func.func @transform_2(%arg0: i32) -> (i32, i32) {
    %c0_i32 = arith.constant 0 : i32
    %c0_i32_0 = arith.constant 0 : i32
    %c0_i32_1 = arith.constant 0 : i32
    return %c0_i32, %c0_i32_0 : i32, i32
  }
  func.func @transform_3(%arg0: i32) -> (i32, i32) {
    %c0_i32 = arith.constant 0 : i32
    %c0_i32_0 = arith.constant 0 : i32
    return %c0_i32, %arg0 : i32, i32
  }
}

</mosaic_0001>

<bundles_post_ra>
// kernel: mlp_forward.1
= control target key start
LH: loop header
LB: loop body
LE: loop exit
PB: predicated region body
PF: predicated region fallthrough
CT: control target
= control target key end

     0   :  { %vm29_vm0 = vcmask 64512   ;;  %v74_v0 = vmov 0   ;;  %s122_s2 = inlined_call_operand.vmem [shape: f32[16,1], index: 2, kind: input, shape index: {}]   ;;  %s123_s0 = inlined_call_operand.vmem [shape: f32[8,8], index: 0, kind: input, shape index: {}]   ;;  %s124_s1 = inlined_call_operand.vmem [shape: f32[16,8], index: 1, kind: input, shape index: {}]   ;;  %s125_s3 = inlined_call_operand.vmem [shape: f32[16,8], index: 3, kind: output, shape index: {}]  }
   0x1   :  { %73 = vset.pattern.permute.xlu0 %v74_v0  ;;  %v17_v1 = vld [vmem:[%s122_s2] sm:$0xff]  ;;  %v15_v4 = vld [vmem:[%s124_s1 + $0x8] sm:$0xff] }
   0x2   :  { %v16_v2 = vld [vmem:[%s123_s0] sm:$0xff]  ;;  %21 = vperm.xlu0 %73, %v17_v1   ;;  %v18_v5 = vld [vmem:[%s122_s2 + $0x8] sm:$0xff] }
   0x3   :  { %68 = vmatpush.xpose.msk.msra.mxu0 %vm29_vm0, %v16_v2  ;;  %v14_v3 = vld [vmem:[%s124_s1] sm:$0xff]  ;;  %71 = vmatpush.xpose.msk.msra.mxu1 %vm29_vm0, %v16_v2 }
   0x6   :  { %69 = vmatmul.msk.f32.vlgmr.msra.gmra.mxu0 %vm29_vm0, %v14_v3  ;;  %70 = vmatmul.msk.f32.vlgmr.msra.gmra.mxu1 %vm29_vm0, %v15_v4 }
   0xa   :  { %26 = vperm.xlu0 %73, %v18_v5  }
  0x74   :  { %v22_v6 = vpop.permute.xlu0 %21 }
  0x7c   :  { %v27_v8 = vpop.permute.xlu0 %26 }
  0x83   :  { %v56_v7 = vpop.f32.mrf.mxu0  ;;  %v59_v10 = vpop.f32.mrf.mxu1 }
  0x84   :  { %v57_v9 = vadd.f32 %v56_v7, %v22_v6  ;;  %v60_v11 = vadd.f32 %v59_v10, %v27_v8 }
  0x86   :  { %62 = vst.msk [vmem:[%s125_s3] sm:$0xff] %vm29_vm0, %v57_v9 }
  0x87   :  { %63 = vst.msk [vmem:[%s125_s3 + $0x8] sm:$0xff] %vm29_vm0, %v60_v11 }

</bundles_post_ra>
